<compile_context>
chip_gen: v7x
topology: tpu7x:2x2x1
jax: 0.10.0
libtpu: 0.0.40
codegen_flags: <defaults>
</compile_context>

<pallas_src>
import functools

import jax
import jax.numpy as jnp
from jax.experimental import pallas as pl
from jax.experimental.pallas import tpu as pltpu

BN_EPS = 1e-5


def _conv_stats_kernel(p_ref, w_ref, y_ref, sum_ref, sq_ref):
    # p_ref:  (K, TM)   patches^T tile (streamed)
    # w_ref:  (OC, K)   weights (resident, constant index_map)
    # y_ref:  (OC, TM)  conv output tile, lane-dense (TM multiple of 128)
    # sum_ref/sq_ref: (OC, 1) per-channel accumulators (revisited block across the grid)
    @pl.when(pl.program_id(0) == 0)
    def _():
        sum_ref[...] = jnp.zeros_like(sum_ref)
        sq_ref[...] = jnp.zeros_like(sq_ref)

    # Conv-as-matmul on the MXU, f32 accumulation.
    y = jnp.dot(w_ref[...], p_ref[...], preferred_element_type=jnp.float32)
    y_ref[...] = y
    # Per-channel partial statistics for this tile (lane reduce over TM, cheap).
    sum_ref[...] += jnp.sum(y, axis=1, keepdims=True)
    sq_ref[...] += jnp.sum(y * y, axis=1, keepdims=True)


def _bn_relu_kernel(y_ref, scale_ref, shift_ref, o_ref):
    # y_ref: (OC, TM); scale/shift: (OC, 1) resident.  One FMA + max per element.
    o_ref[...] = jnp.maximum(
        y_ref[...] * scale_ref[...] + shift_ref[...], 0.0
    ).astype(o_ref.dtype)


def _im2col_t(x_nchw, kh, kw, stride, padding):
    """Zero-pad + im2col, transposed to (K, M): K = C*KH*KW (sublane), M = N*Ho*Wo (lane)."""
    n, c, h, w = x_nchw.shape
    xp = jnp.pad(x_nchw, ((0, 0), (0, 0), (padding, padding), (padding, padding)))
    ho = (h + 2 * padding - kh) // stride + 1
    wo = (w + 2 * padding - kw) // stride + 1
    cols = []
    for i in range(kh):
        for j in range(kw):
            cols.append(xp[:, :, i:i + ho * stride:stride, j:j + wo * stride:stride])
    # (N, C, KH*KW, Ho, Wo) -> (C*KH*KW, N*Ho*Wo); k index = c*KH*KW + i*KW + j
    pt = jnp.stack(cols, axis=2).reshape(n, c * kh * kw, ho, wo)
    pt = pt.transpose(1, 0, 2, 3).reshape(c * kh * kw, n * ho * wo)
    return pt, ho, wo


@functools.partial(
    jax.jit, static_argnames=("stride", "padding", "block_m", "compute_dtype")
)
def basic_conv2d(x, conv_w, conv_b, bn_gamma, bn_beta, *, stride=1, padding=1,
                 block_m=512, compute_dtype=jnp.float32):
    """Conv2d + BatchNorm2d(training batch stats) + ReLU.  x is NCHW."""
    n, c_in, _, _ = x.shape
    oc, _, kh, kw = conv_w.shape
    k = c_in * kh * kw

    # The conv bias is exactly cancelled by train-mode BN mean subtraction -> drop it.
    del conv_b

    pt, ho, wo = _im2col_t(x, kh, kw, stride, padding)            # (K, M)
    m = n * ho * wo

    # M tile: multiple of 128 (lane dim).  Pad M up; zero patch rows produce y == 0 exactly
    # (no bias), so they contribute nothing to the sums and we divide by the true M below.
    tm = max(128, (min(block_m, m) // 128) * 128)
    num_tiles = -(-m // tm)
    m_pad = num_tiles * tm
    pt = jnp.pad(pt, ((0, 0), (0, m_pad - m)))

    pt = pt.astype(compute_dtype)                                 # bf16 option: halves HBM reads
    w2d = conv_w.reshape(oc, k).astype(compute_dtype)             # (OC, K)

    # Explicit VMEM budget (portable to v7x's 64 MiB physical / 32 MiB scoped default).
    vmem_limit = 32 * 1024 * 1024

    # ---- Pass 1: conv matmul per M tile + per-channel sum / sum-of-squares -----------------
    y_t, ch_sum, ch_sq = pl.pallas_call(
        _conv_stats_kernel,
        out_shape=(
            jax.ShapeDtypeStruct((oc, m_pad), jnp.float32),       # y^T (lane-dense)
            jax.ShapeDtypeStruct((oc, 1), jnp.float32),           # sum_c
            jax.ShapeDtypeStruct((oc, 1), jnp.float32),           # sumsq_c
        ),
        grid=(num_tiles,),
        in_specs=[
            pl.BlockSpec((k, tm), lambda i: (0, i)),              # patches tile (streamed)
            pl.BlockSpec((oc, k), lambda i: (0, 0)),              # weight (resident)
        ],
        out_specs=(
            pl.BlockSpec((oc, tm), lambda i: (0, i)),
            pl.BlockSpec((oc, 1), lambda i: (0, 0)),              # revisited accumulator
            pl.BlockSpec((oc, 1), lambda i: (0, 0)),              # revisited accumulator
        ),
        compiler_params=pltpu.CompilerParams(
            dimension_semantics=("arbitrary",),                   # stats accumulate across axis
            vmem_limit_bytes=vmem_limit,
        ),
    )(pt, w2d)

    # ---- Tiny glue: fold BN stats into a per-channel scale/shift (all f32) -----------------
    m_f = jnp.float32(m)
    mean = ch_sum / m_f
    var = jnp.maximum(ch_sq / m_f - mean * mean, 0.0)             # one-pass var, clamp cancellation
    scale = bn_gamma.reshape(oc, 1).astype(jnp.float32) * jax.lax.rsqrt(var + BN_EPS)
    shift = bn_beta.reshape(oc, 1).astype(jnp.float32) - mean * scale

    # ---- Pass 2: normalize (FMA) + ReLU, fully parallel over M tiles ------------------------
    out_t = pl.pallas_call(
        _bn_relu_kernel,
        out_shape=jax.ShapeDtypeStruct((oc, m_pad), x.dtype),
        grid=(num_tiles,),
        in_specs=[
            pl.BlockSpec((oc, tm), lambda i: (0, i)),
            pl.BlockSpec((oc, 1), lambda i: (0, 0)),              # scale (resident)
            pl.BlockSpec((oc, 1), lambda i: (0, 0)),              # shift (resident)
        ],
        out_specs=pl.BlockSpec((oc, tm), lambda i: (0, i)),
        compiler_params=pltpu.CompilerParams(
            dimension_semantics=("parallel",),                    # megacore-shardable
            vmem_limit_bytes=vmem_limit,
        ),
    )(y_t, scale, shift)

    # (OC, M) -> (N, OC, Ho, Wo)
    return out_t[:, :m].reshape(oc, n, ho, wo).transpose(1, 0, 2, 3)


def _reference(x, conv_w, conv_b, bn_gamma, bn_beta, *, stride=1, padding=1):
    y = jax.lax.conv_general_dilated(
        x, conv_w, window_strides=(stride, stride),
        padding=[(padding, padding), (padding, padding)],
        dimension_numbers=("NCHW", "OIHW", "NCHW"),
    ) + conv_b.reshape(1, -1, 1, 1)
    mean = jnp.mean(y, axis=(0, 2, 3), keepdims=True)
    var = jnp.mean((y - mean) ** 2, axis=(0, 2, 3), keepdims=True)
    y = (y - mean) / jnp.sqrt(var + BN_EPS)
    y = y * bn_gamma.reshape(1, -1, 1, 1) + bn_beta.reshape(1, -1, 1, 1)
    return jnp.maximum(y, 0.0)


if __name__ == "__main__":
    # BasicConv2d(input_channels=4, output_channels=8, kernel_size=3, padding=1)
    # applied to a (2, 4, 16, 16) NCHW input.
    N, C_IN, H, W = 2, 4, 16, 16
    OC, KH, KW = 8, 3, 3
    STRIDE, PAD = 1, 1

    key = jax.random.PRNGKey(0)
    kx, kw_, kb = jax.random.split(key, 3)

    x = jax.random.normal(kx, (N, C_IN, H, W), dtype=jnp.float32)

    # Deterministic PyTorch-like init: uniform(-1/sqrt(fan_in), 1/sqrt(fan_in)).
    fan_in = C_IN * KH * KW
    bound = 1.0 / (fan_in ** 0.5)
    conv_w = jax.random.uniform(kw_, (OC, C_IN, KH, KW), jnp.float32, -bound, bound)
    conv_b = jax.random.uniform(kb, (OC,), jnp.float32, -bound, bound)
    bn_gamma = jnp.ones((OC,), jnp.float32)   # nn.BatchNorm2d default weight
    bn_beta = jnp.zeros((OC,), jnp.float32)   # nn.BatchNorm2d default bias

    ref = _reference(x, conv_w, conv_b, bn_gamma, bn_beta, stride=STRIDE, padding=PAD)

    # f32 path with block_m=128 -> a 4-step grid over M (exercises tiling + stat accumulation).
    out = basic_conv2d(x, conv_w, conv_b, bn_gamma, bn_beta,
                       stride=STRIDE, padding=PAD, block_m=128)
    out = jax.block_until_ready(out)
    assert out.shape == (N, OC, H, W), out.shape
    assert jnp.allclose(out, ref, atol=1e-4, rtol=1e-4), float(jnp.max(jnp.abs(out - ref)))

    # bf16 MXU-operand path (halves HBM read traffic on v6e/v7x); BN math stays f32.
    out_bf16 = basic_conv2d(x, conv_w, conv_b, bn_gamma, bn_beta,
                            stride=STRIDE, padding=PAD, block_m=128,
                            compute_dtype=jnp.bfloat16)
    out_bf16 = jax.block_until_ready(out_bf16)
    assert jnp.allclose(out_bf16, ref, atol=1e-1, rtol=1e-1), \
        float(jnp.max(jnp.abs(out_bf16 - ref)))

    print("KERNEL_OK")
</pallas_src>

<mosaic_0001>
module attributes {stable_mosaic.version = 11 : i64} {
  func.func @_conv_stats_kernel(%arg0: i32, %arg1: memref<36x128xf32, #tpu.memory_space<vmem>>, %arg2: memref<8x36xf32, #tpu.memory_space<vmem>>, %arg3: memref<8x128xf32, #tpu.memory_space<vmem>>, %arg4: memref<8x1xf32, #tpu.memory_space<vmem>>, %arg5: memref<8x1xf32, #tpu.memory_space<vmem>>) attributes {dimension_semantics = [#tpu.dimension_semantics<arbitrary>], iteration_bounds = array<i64: 4>, scalar_prefetch = 0 : i64, scratch_operands = 0 : i64, tpu.core_type = #tpu.core_type<tc>, window_params = [{transform_indices = @transform_0, window_bounds = array<i64: 36, 128>}, {pipeline_mode = #tpu.pipeline_mode<synchronous>, transform_indices = @transform_1, window_bounds = array<i64: 8, 36>}, {transform_indices = @transform_2, window_bounds = array<i64: 8, 128>}, {pipeline_mode = #tpu.pipeline_mode<synchronous>, transform_indices = @transform_3, window_bounds = array<i64: 8, 1>}, {pipeline_mode = #tpu.pipeline_mode<synchronous>, transform_indices = @transform_4, window_bounds = array<i64: 8, 1>}]} {
    %c0_i32 = arith.constant 0 : i32
    %0 = arith.cmpi eq, %arg0, %c0_i32 : i32
    %1 = arith.extui %0 : i1 to i32
    %c0_i32_0 = arith.constant 0 : i32
    %2 = arith.cmpi ne, %1, %c0_i32_0 : i32
    scf.if %2 {
      %cst_16 = arith.constant 0.000000e+00 : f32
      %18 = vector.broadcast %cst_16 : f32 to vector<8x1xf32>
      %c0_17 = arith.constant 0 : index
      %c0_18 = arith.constant 0 : index
      %19 = vector.load %arg4[%c0_17, %c0_18] : memref<8x1xf32, #tpu.memory_space<vmem>>, vector<8x1xf32>
      tpu.vector_store %arg4[%c0_17, %c0_18], %18 {strides = array<i32>} : memref<8x1xf32, #tpu.memory_space<vmem>>, vector<8x1xf32>,
      %cst_19 = arith.constant 0.000000e+00 : f32
      %20 = vector.broadcast %cst_19 : f32 to vector<8x1xf32>
      %c0_20 = arith.constant 0 : index
      %c0_21 = arith.constant 0 : index
      %21 = vector.load %arg5[%c0_20, %c0_21] : memref<8x1xf32, #tpu.memory_space<vmem>>, vector<8x1xf32>
      tpu.vector_store %arg5[%c0_20, %c0_21], %20 {strides = array<i32>} : memref<8x1xf32, #tpu.memory_space<vmem>>, vector<8x1xf32>,
    } else {
    }
    %c0 = arith.constant 0 : index
    %c0_1 = arith.constant 0 : index
    %3 = vector.load %arg2[%c0, %c0_1] : memref<8x36xf32, #tpu.memory_space<vmem>>, vector<8x36xf32>
    %c0_2 = arith.constant 0 : index
    %c0_3 = arith.constant 0 : index
    %4 = vector.load %arg1[%c0_2, %c0_3] : memref<36x128xf32, #tpu.memory_space<vmem>>, vector<36x128xf32>
    %cst = arith.constant dense<0.000000e+00> : vector<8x128xf32>
    %5 = tpu.matmul %3, %4, %cst {dimension_numbers = #tpu.dot_dimension_numbers<[1], [0], [0], [1], [0, 0, 1, 1], [], []>} : vector<8x36xf32>, vector<36x128xf32>, vector<8x128xf32> -> vector<8x128xf32>
    %c0_4 = arith.constant 0 : index
    %c0_5 = arith.constant 0 : index
    %6 = vector.load %arg3[%c0_4, %c0_5] : memref<8x128xf32, #tpu.memory_space<vmem>>, vector<8x128xf32>
    tpu.vector_store %arg3[%c0_4, %c0_5], %5 {strides = array<i32>} : memref<8x128xf32, #tpu.memory_space<vmem>>, vector<8x128xf32>,
    %c0_6 = arith.constant 0 : index
    %c0_7 = arith.constant 0 : index
    %7 = vector.load %arg4[%c0_6, %c0_7] : memref<8x1xf32, #tpu.memory_space<vmem>>, vector<8x1xf32>
    %cst_8 = arith.constant dense<0.000000e+00> : vector<8xf32>
    %8 = vector.multi_reduction <add>, %5, %cst_8 [1] : vector<8x128xf32> to vector<8xf32>
    %9 = vector.shape_cast %8 : vector<8xf32> to vector<8x1xf32>
    %10 = arith.addf %7, %9 : vector<8x1xf32>
    %c0_9 = arith.constant 0 : index
    %c0_10 = arith.constant 0 : index
    %11 = vector.load %arg4[%c0_9, %c0_10] : memref<8x1xf32, #tpu.memory_space<vmem>>, vector<8x1xf32>
    tpu.vector_store %arg4[%c0_9, %c0_10], %10 {strides = array<i32>} : memref<8x1xf32, #tpu.memory_space<vmem>>, vector<8x1xf32>,
    %c0_11 = arith.constant 0 : index
    %c0_12 = arith.constant 0 : index
    %12 = vector.load %arg5[%c0_11, %c0_12] : memref<8x1xf32, #tpu.memory_space<vmem>>, vector<8x1xf32>
    %13 = arith.mulf %5, %5 : vector<8x128xf32>
    %cst_13 = arith.constant dense<0.000000e+00> : vector<8xf32>
    %14 = vector.multi_reduction <add>, %13, %cst_13 [1] : vector<8x128xf32> to vector<8xf32>
    %15 = vector.shape_cast %14 : vector<8xf32> to vector<8x1xf32>
    %16 = arith.addf %12, %15 : vector<8x1xf32>
    %c0_14 = arith.constant 0 : index
    %c0_15 = arith.constant 0 : index
    %17 = vector.load %arg5[%c0_14, %c0_15] : memref<8x1xf32, #tpu.memory_space<vmem>>, vector<8x1xf32>
    tpu.vector_store %arg5[%c0_14, %c0_15], %16 {strides = array<i32>} : memref<8x1xf32, #tpu.memory_space<vmem>>, vector<8x1xf32>,
    return
  }
  func.func @transform_0(%arg0: i32) -> (i32, i32) {
    %c0_i32 = arith.constant 0 : i32
    %c0_i32_0 = arith.constant 0 : i32
    return %c0_i32, %arg0 : i32, i32
  }
  func.func @transform_1(%arg0: i32) -> (i32, i32) {
    %c0_i32 = arith.constant 0 : i32
    %c0_i32_0 = arith.constant 0 : i32
    %c0_i32_1 = arith.constant 0 : i32
    return %c0_i32, %c0_i32_0 : i32, i32
  }
  func.func @transform_2(%arg0: i32) -> (i32, i32) {
    %c0_i32 = arith.constant 0 : i32
    %c0_i32_0 = arith.constant 0 : i32
    return %c0_i32, %arg0 : i32, i32
  }
  func.func @transform_3(%arg0: i32) -> (i32, i32) {
    %c0_i32 = arith.constant 0 : i32
    %c0_i32_0 = arith.constant 0 : i32
    %c0_i32_1 = arith.constant 0 : i32
    return %c0_i32, %c0_i32_0 : i32, i32
  }
  func.func @transform_4(%arg0: i32) -> (i32, i32) {
    %c0_i32 = arith.constant 0 : i32
    %c0_i32_0 = arith.constant 0 : i32
    %c0_i32_1 = arith.constant 0 : i32
    return %c0_i32, %c0_i32_0 : i32, i32
  }
}

module attributes {stable_mosaic.version = 11 : i64} {
  func.func @_bn_relu_kernel(%arg0: i32, %arg1: memref<8x128xf32, #tpu.memory_space<vmem>>, %arg2: memref<8x1xf32, #tpu.memory_space<vmem>>, %arg3: memref<8x1xf32, #tpu.memory_space<vmem>>, %arg4: memref<8x128xf32, #tpu.memory_space<vmem>>) attributes {dimension_semantics = [#tpu.dimension_semantics<parallel>], iteration_bounds = array<i64: 4>, scalar_prefetch = 0 : i64, scratch_operands = 0 : i64, tpu.core_type = #tpu.core_type<tc>, window_params = [{transform_indices = @transform_0, window_bounds = array<i64: 8, 128>}, {pipeline_mode = #tpu.pipeline_mode<synchronous>, transform_indices = @transform_1, window_bounds = array<i64: 8, 1>}, {pipeline_mode = #tpu.pipeline_mode<synchronous>, transform_indices = @transform_2, window_bounds = array<i64: 8, 1>}, {transform_indices = @transform_3, window_bounds = array<i64: 8, 128>}]} {
    %c0 = arith.constant 0 : index
    %c0_0 = arith.constant 0 : index
    %0 = vector.load %arg1[%c0, %c0_0] : memref<8x128xf32, #tpu.memory_space<vmem>>, vector<8x128xf32>
    %c0_1 = arith.constant 0 : index
    %c0_2 = arith.constant 0 : index
    %1 = vector.load %arg2[%c0_1, %c0_2] : memref<8x1xf32, #tpu.memory_space<vmem>>, vector<8x1xf32>
    %2 = vector.broadcast %1 : vector<8x1xf32> to vector<8x128xf32>
    %3 = arith.mulf %0, %2 : vector<8x128xf32>
    %c0_3 = arith.constant 0 : index
    %c0_4 = arith.constant 0 : index
    %4 = vector.load %arg3[%c0_3, %c0_4] : memref<8x1xf32, #tpu.memory_space<vmem>>, vector<8x1xf32>
    %5 = vector.broadcast %4 : vector<8x1xf32> to vector<8x128xf32>
    %6 = arith.addf %3, %5 : vector<8x128xf32>
    %cst = arith.constant 0.000000e+00 : f32
    %7 = vector.broadcast %cst : f32 to vector<8x128xf32>
    %8 = arith.maximumf %6, %7 : vector<8x128xf32>
    %c0_5 = arith.constant 0 : index
    %c0_6 = arith.constant 0 : index
    %9 = vector.load %arg4[%c0_5, %c0_6] : memref<8x128xf32, #tpu.memory_space<vmem>>, vector<8x128xf32>
    tpu.vector_store %arg4[%c0_5, %c0_6], %8 {strides = array<i32>} : memref<8x128xf32, #tpu.memory_space<vmem>>, vector<8x128xf32>,
    return
  }
  func.func @transform_0(%arg0: i32) -> (i32, i32) {
    %c0_i32 = arith.constant 0 : i32
    %c0_i32_0 = arith.constant 0 : i32
    return %c0_i32, %arg0 : i32, i32
  }
  func.func @transform_1(%arg0: i32) -> (i32, i32) {
    %c0_i32 = arith.constant 0 : i32
    %c0_i32_0 = arith.constant 0 : i32
    %c0_i32_1 = arith.constant 0 : i32
    return %c0_i32, %c0_i32_0 : i32, i32
  }
  func.func @transform_2(%arg0: i32) -> (i32, i32) {
    %c0_i32 = arith.constant 0 : i32
    %c0_i32_0 = arith.constant 0 : i32
    %c0_i32_1 = arith.constant 0 : i32
    return %c0_i32, %c0_i32_0 : i32, i32
  }
  func.func @transform_3(%arg0: i32) -> (i32, i32) {
    %c0_i32 = arith.constant 0 : i32
    %c0_i32_0 = arith.constant 0 : i32
    return %c0_i32, %arg0 : i32, i32
  }
}

</mosaic_0001>

<bundles_post_ra>
// kernel: basic_conv2d.3
= control target key start
LH: loop header
LB: loop body
LE: loop exit
PB: predicated region body
PF: predicated region fallthrough
CT: control target
= control target key end

     0   :  { %s284_s12 = smov 0   ;;  %s301_s0 = inlined_call_operand.vmem [shape: f32[8,512], index: 0, kind: input, shape index: {}]   ;;  %s302_s1 = inlined_call_operand.vmem [shape: f32[8,1], index: 1, kind: input, shape index: {}]   ;;  %s303_s2 = inlined_call_operand.vmem [shape: f32[8,1], index: 2, kind: input, shape index: {}]   ;;  %s304_s3 = inlined_call_operand.vmem [shape: f32[8,512], index: 3, kind: output, shape index: {}]  }
   0x1 LB: > { %s236_s13 = sadd.s32 4294967295, %s261_s12   ;;  %p240_p0 = scmp.ge.s32.totalorder %s261_s12, 1  ;;  %s261_s12 = sphi %s284_s12, %s13_s12  }
   0x2   : > { %p136_p1 = scmp.lt.s32.totalorder %s261_s12, 5 }
   0x4   : > { %p137_p2 = pnand %p240_p0, %p136_p1 }
   0x5   : > { %v167_v0 = vld [vmem:[%s302_s1] sm:$0xff] (!%p137_p2)  ;;  %v263_v1 = vmov (!%p137_p2), 0   ;;  %p158_p3 = scmp.lt.s32.totalorder (!%p137_p2), %s236_s13, 3 }
   0x6   : > { %140 = sbr.rel (%p137_p2) target bundleno = 144 (0x90), region = 32  ;;  %254 = vset.pattern.permute.xlu0 (!%p137_p2), %v263_v1  ;;  %v174_v2 = vld [vmem:[%s303_s2] sm:$0xff] (!%p137_p2) }
   0x7   : > { %170 = vperm.xlu0 (!%p137_p2), %254, %v167_v0  }
   0xb   : > { %177 = vperm.xlu0 (!%p137_p2), %254, %v174_v2  }
   0xd   : > { %s306_s13 = smov (!%p158_p3, %s236_s13), 3 }
   0xe   : > { %s241_s18 = sshll.u32 %s306_s13, 3 }
   0xf   : > { %s161_s21 = scalar_lea.vmem %s301_s0, %s241_s18  ;;  %s165_s24 = scalar_lea.vmem %s304_s3, %s241_s18 }
  0x10   : > { %v166_v4 = vld [vmem:[%s161_s21] sm:$0xff] }
  0x86   : > { %v171_v3 = vpop.permute.xlu0 %170 }
  0x87   : > { %v173_v5 = vmul.f32 %v171_v3, %v166_v4 }
  0x8a   : > { %v178_v6 = vpop.permute.xlu0 %177 }
  0x8b   : > { %v180_v7 = vadd.f32 %v178_v6, %v173_v5 }
  0x8d   : > { %v181_v8 = vmax.f32 %v180_v7, 0.0 }
  0x8f   : > { %182 = vst [vmem:[%s165_s24] sm:$0xff] %v181_v8 }
  0x90 PF: > { %s13_s12 = sadd.s32 1, %s261_s12  }
  0x91   : > { %p10_p4 = scmp.ge.s32.totalorder %s13_s12, 6  }
  0x93   :  { %12 = sbr.rel (!%p10_p4) target bundleno = 1 (0x1), region = 62 }

// kernel: basic_conv2d.2
= control target key start
LH: loop header
LB: loop body
LE: loop exit
PB: predicated region body
PF: predicated region fallthrough
CT: control target
= control target key end

     0   :  { %s536_s15 = smov 0   ;;  %s538_s16 = smov 0   ;;  %s615_s0 = inlined_call_operand.vmem [shape: f32[36,512], index: 0, kind: input, shape index: {}]   ;;  %s616_s1 = inlined_call_operand.vmem [shape: f32[8,36], index: 1, kind: input, shape index: {}]   ;;  %s617_s2 = inlined_call_operand.vmem [shape: f32[8,512], index: 2, kind: output, shape index: {0}]   ;;  %s618_s3 = inlined_call_operand.vmem [shape: f32[8,1], index: 3, kind: output, shape index: {1}]   ;;  %s619_s4 = inlined_call_operand.vmem [shape: f32[8,1], index: 4, kind: output, shape index: {2}]  }
   0x1   :  { %s540_s17 = smov 0  }
   0x2 LB: > { %s552_s18 = sadd.s32 4294967295, %s505_s17   ;;  %s555_s19 = sadd.s32 1, %s505_s17   ;;  %s505_s17 = sphi %s540_s17, %s622_s17   ;;  %s501_s16 = sphi %s538_s16, %s621_s16   ;;  %s497_s15 = sphi %s536_s15, %s620_s15  }
   0x3   : > { %s19_s20 = ssub.s32 %s505_s17, %s555_s19  ;;  %s22_s21 = sadd.s32 1, %s501_s16 }
   0x4   : > { %p20_p0 = scmp.eq.s32.totalorder %s19_s20, 0  ;;  %p29_p1 = scmp.ne.s32.totalorder %s501_s16, %s497_s15 }
   0x5   : > { %p30_p2 = scmp.eq.s32.totalorder %s505_s17, 0  ;;  %p419_p4 = scmp.ge.s32.totalorder %s505_s17, 4 }
   0x6   : > { %s564_s22 = scalar_select %p20_p0, %s501_s16, %s22_s21  }
   0x7   : > { %p31_p3 = por %p30_p2, %p29_p1  ;;  %147 = sbr.rel (%p419_p4) target bundleno = 23 (0x17), region = 20 }
   0xe   : > { %150 = sbr.rel (!%p31_p3) target bundleno = 23 (0x17), region = 24  ;;  %s152_s23 = sand.u32 (%p31_p3), 1, %s501_s16  }
   0xf   : > { %s420_s24 = sshll.u32 (%p31_p3), %s505_s17, 3  ;;  %s453_s25 = smul.u32 (%p31_p3), 40, %s152_s23 }
  0x10   : > { %s156_s28 = scalar_lea.vmem (%p31_p3), %s615_s0, %s420_s24 }
  0x11   : > { %v192_v0 = vld [vmem:[%s156_s28] sm:$0xff] (%p31_p3)  ;;  %s154_s29 = scalar_lea.vmem (%p31_p3), [#allocation2], %s453_s25 }
  0x12   : > { %v194_v1 = vld [vmem:[%s156_s28 + $0x20] sm:$0xff] (%p31_p3)  ;;  %193 = vst [vmem:[%s154_s29] sm:$0xff] (%p31_p3), %v192_v0 }
  0x13   : > { %v196_v2 = vld [vmem:[%s156_s28 + $0x40] sm:$0xff] (%p31_p3)  ;;  %195 = vst [vmem:[%s154_s29 + $0x8] sm:$0xff] (%p31_p3), %v194_v1 }
  0x14   : > { %v198_v3 = vld [vmem:[%s156_s28 + $0x60] sm:$0xff] (%p31_p3)  ;;  %197 = vst [vmem:[%s154_s29 + $0x10] sm:$0xff] (%p31_p3), %v196_v2 }
  0x15   : > { %v200_v4 = vld [vmem:[%s156_s28 + $0x80] sm:$0xff]  ;;  %199 = vst [vmem:[%s154_s29 + $0x18] sm:$0xff] %v198_v3 }
  0x16   : > { %201 = vst [vmem:[%s154_s29 + $0x20] sm:$0xff] %v200_v4 }
  0x17 PF: > { %p421_p5 = scmp.ge.s32.totalorder %s505_s17, 1  ;;  %p206_p6 = scmp.lt.s32.totalorder %s505_s17, 5 }
  0x19   : > { %p207_p7 = pnand %p421_p5, %p206_p6 }
  0x1a   : > { %s213_s30 = sand.u32 (!%p207_p7), 1, %s497_s15   ;;  %p237_p8 = scmp.lt.s32.totalorder (!%p207_p7), %s552_s18, 3 }
  0x1b   : > { %210 = sbr.rel (%p207_p7) target bundleno = 415 (0x19f), region = 62  ;;  %p423_p9 = scmp.ne.s32.totalorder (!%p207_p7), %s552_s18, 0 }
  0x1c   : > { %s454_s5 = smul.u32 (!%p207_p7), 40, %s213_s30 }
  0x1e   : > { %s215_s11 = scalar_lea.vmem (!%p207_p7), [#allocation2], %s454_s5 }
  0x22   : > { %s238_s6 = scalar_select %p237_p8, %s552_s18, 3 }
  0x23   : > { %244 = sbr.rel (%p423_p9) target bundleno = 42 (0x2a), region = 70  ;;  %vm245_vm0 = vcmask (!%p423_p9), 7168   ;;  %v507_v5 = vmov (!%p423_p9), 0.0  }
  0x24   : > { %s422_s7 = sshll.u32 %s238_s6, 3  ;;  %246 = vst.msk [vmem:[%s618_s3] sm:$0xff] (!%p423_p9), %vm245_vm0, %v507_v5  ;;  %247 = vst.msk [vmem:[%s619_s4] sm:$0xff] (!%p423_p9), %vm245_vm0, %v507_v5 }
  0x25   : > { %s580_s10 = scalar_lea.vmem %s617_s2, %s422_s7 }
  0x2a PF: > { %v249_v6 = vld [vmem:[%s215_s11] sm:$0xff]  ;;  %v250_v7 = vld [vmem:[%s215_s11 + $0x8] sm:$0xff]  ;;  %v251_v8 = vld [vmem:[%s215_s11 + $0x10] sm:$0xff]  ;;  %v508_v9 = vmov 0.0|0.0   ;;  %vm509_vm1 = vmmov 0   ;;  %v510_v12 = vmov 0.0  }
  0x2b   : > { %447 = vmatprep.subr.bf16.mxu0 %v508_v9  ;;  %v448_v10 = vpack.c.bf16 %v250_v7, %v249_v6  ;;  %v252_v11 = vld [vmem:[%s215_s11 + $0x18] sm:$0xff]  ;;  %444 = vmatprep.mubr.msk.f32.mxu0 %vm509_vm1, %v510_v12  ;;  %v253_v14 = vld [vmem:[%s215_s11 + $0x20] sm:$0xf]  ;;  %vm258_vm2 = vcmask 1043456   ;;  %vm254_vm3 = vcmask 293888   ;;  %vm337_vm4 = vcmask 7168  }
  0x2c   : > { %v451_v13 = vpack.c.bf16 %v252_v11, %v251_v8  ;;  %v248_v15 = vld [vmem:[%s616_s1] sm:$0xff] }
  0x2d   : > { %449 = vmatpush3.bf16.msra.mxu0 %v448_v10  ;;  %v333_v19 = vld [vmem:[%s618_s3] sm:$0xff] }
  0x2e   : > { %450 = vmatprep.subr.bf16.mxu0 %v508_v9  ;;  %v339_v22 = vld [vmem:[%s619_s4] sm:$0xff] }
  0x31   : > { %452 = vmatpush3.bf16.msra.mxu0 %v451_v13 }
  0x32   : > { %442 = vmatprep.subr.mxu0 %v510_v12 }
  0x35   : > { %443 = vmatpush3.msk.msra.mxu0 %vm258_vm2, %v253_v14 }
  0x36   : > { %445 = vmatmul.mubr.msk.f32.vlgmr.msra.gmra.mrb[0].mxu0 %vm254_vm3, %v248_v15 }
 0x109   : > { %v328_v16 = vpop.f32.mrb[0].mxu0 }
 0x10a   : > { %332 = vst [vmem:[%s580_s10] sm:$0xff] %v328_v16  ;;  %334 = vadd.xlane.f32.xlu0 %v328_v16  ;;  %v446_v17 = vpop.f32.mrb[1].mxu0  ;;  %v340_v18 = vmul.f32 %v328_v16, %v328_v16 }
 0x10e   : > { %341 = vadd.xlane.f32.xlu0 %v340_v18 }
 0x197   : > { %v335_v20 = vpop.xlane.xlu0 %334 }
 0x198   : > { %v336_v21 = vadd.f32 %v335_v20, %v333_v19 }
 0x19a   : > { %338 = vst.msk [vmem:[%s618_s3] sm:$0xff] %vm337_vm4, %v336_v21 }
 0x19b   : > { %v342_v23 = vpop.xlane.xlu0 %341 }
 0x19c   : > { %v343_v24 = vadd.f32 %v342_v23, %v339_v22 }
 0x19e   : > { %344 = vst.msk [vmem:[%s619_s4] sm:$0xff] %vm337_vm4, %v343_v24 }
 0x19f PF: > { %p12_p10 = scmp.ge.s32.totalorder %s555_s19, 6   ;;  %s620_s15 = smov %s501_s16 }
 0x1a0   : > { %s621_s16 = smov %s564_s22  ;;  %s622_s17 = smov %s555_s19 }
 0x1a1   :  { %14 = sbr.rel (!%p12_p10) target bundleno = 2 (0x2), region = 121 }

</bundles_post_ra>
